<compile_context>
chip_gen: v6e
topology: v6e:2x2x1
jax: 0.10.0
libtpu: 0.0.40
codegen_flags: <defaults>
</compile_context>

<pallas_src>
import functools

import jax
import jax.numpy as jnp
from jax.experimental import pallas as pl
from jax.experimental.pallas import tpu as pltpu

_LEAKY_SLOPE = 0.01


def _round_up(x, m):
    return ((x + m - 1) // m) * m


def _fold_lane_groups(v, pack, d_out):
    """(1, pack*d_out) -> (1, d_out): sum the `pack` lane groups (one per packed row slot)."""
    total = v[:, 0:d_out]
    for k in range(1, pack):
        total = total + v[:, k * d_out:(k + 1) * d_out]
    return total


def _finalize_scale_shift(s_sum, q_sum, gamma, beta, *, pack, d_out, n_rows, eps):
    """Fold packed-lane partial sums into per-feature batch stats and emit the BatchNorm
    affine folded as y = h * scale + shift, re-tiled to the packed lane layout."""
    inv_n = jnp.float32(1.0 / n_rows)
    mean = _fold_lane_groups(s_sum, pack, d_out) * inv_n
    # Single-pass variance E[h^2] - mean^2 (clamped at 0); fine for normalized activations.
    var = jnp.maximum(_fold_lane_groups(q_sum, pack, d_out) * inv_n - mean * mean, 0.0)
    scale = gamma * jax.lax.rsqrt(var + eps)
    shift = beta - mean * scale
    if pack > 1:
        scale = jnp.concatenate([scale] * pack, axis=1)
        shift = jnp.concatenate([shift] * pack, axis=1)
    return scale, shift


def _masked_rows(h, tile_idx, tn_p, n_packed):
    row = tile_idx * tn_p + jax.lax.broadcasted_iota(jnp.int32, h.shape, 0)
    return jnp.where(row < n_packed, h, 0.0)


# --------------------------------------------------------------------------------------
# Two-pass path (large N fallback): pass 1 = batch stats, pass 2 = apply (recompute matmul)
# --------------------------------------------------------------------------------------
def _stats_kernel(x_ref, w_ref, gamma_ref, beta_ref, scale_ref, shift_ref,
                  s_acc, q_acc, *, n_rows, n_packed, pack, d_out, eps):
    i = pl.program_id(0)
    nt = pl.num_programs(0)
    tn_p = x_ref.shape[0]

    @pl.when(i == 0)
    def _():
        s_acc[...] = jnp.zeros_like(s_acc)
        q_acc[...] = jnp.zeros_like(q_acc)

    # (tn_p, 64*pack) @ (64*pack, 32*pack) MXU matmul with f32 accumulation.
    h = jnp.dot(x_ref[...], w_ref[...], preferred_element_type=jnp.float32)
    if n_packed % tn_p != 0:
        # Partial last tile: Pallas edge-block OOB rows hold unspecified data -> mask them.
        h = _masked_rows(h, i, tn_p, n_packed)
    s_acc[...] += jnp.sum(h, axis=0, keepdims=True)
    q_acc[...] += jnp.sum(h * h, axis=0, keepdims=True)

    @pl.when(i == nt - 1)
    def _():
        scale, shift = _finalize_scale_shift(
            s_acc[...], q_acc[...], gamma_ref[...], beta_ref[...],
            pack=pack, d_out=d_out, n_rows=n_rows, eps=eps)
        scale_ref[...] = scale
        shift_ref[...] = shift


def _apply_kernel(x_ref, w_ref, scale_ref, shift_ref, o_ref):
    h = jnp.dot(x_ref[...], w_ref[...], preferred_element_type=jnp.float32)
    y = h * scale_ref[...] + shift_ref[...]
    o_ref[...] = jnp.where(y >= 0, y, _LEAKY_SLOPE * y).astype(o_ref.dtype)


# --------------------------------------------------------------------------------------
# Fused single-read path: phase 0 = matmul + stats (h kept resident in VMEM),
# phase 1 = normalize + LeakyReLU from the resident h.
# --------------------------------------------------------------------------------------
def _fused_kernel(x_ref, w_ref, gamma_ref, beta_ref, o_ref,
                  h_store, s_acc, q_acc, scale_sc, shift_sc,
                  *, n_rows, n_packed, pack, d_out, eps):
    p = pl.program_id(0)          # 0: matmul + stats, 1: normalize + activation
    j = pl.program_id(1)
    nt = pl.num_programs(1)
    tn_p = x_ref.shape[0]
    off = pl.multiple_of(j * tn_p, tn_p)

    @pl.when(p == 0)
    def _():
        @pl.when(j == 0)
        def _():
            s_acc[...] = jnp.zeros_like(s_acc)
            q_acc[...] = jnp.zeros_like(q_acc)

        h = jnp.dot(x_ref[...], w_ref[...], preferred_element_type=jnp.float32)
        h_store[pl.ds(off, tn_p), :] = h          # keep h resident; x read from HBM once

        hm = h
        if n_packed % tn_p != 0:
            hm = _masked_rows(h, j, tn_p, n_packed)
        s_acc[...] += jnp.sum(hm, axis=0, keepdims=True)
        q_acc[...] += jnp.sum(hm * hm, axis=0, keepdims=True)

        @pl.when(j == nt - 1)
        def _():
            scale, shift = _finalize_scale_shift(
                s_acc[...], q_acc[...], gamma_ref[...], beta_ref[...],
                pack=pack, d_out=d_out, n_rows=n_rows, eps=eps)
            scale_sc[...] = scale
            shift_sc[...] = shift

    @pl.when(p == 1)
    def _():
        h = h_store[pl.ds(off, tn_p), :]
        y = h * scale_sc[...] + shift_sc[...]
        o_ref[...] = jnp.where(y >= 0, y, _LEAKY_SLOPE * y).astype(o_ref.dtype)


# --------------------------------------------------------------------------------------
# Wrapper
# --------------------------------------------------------------------------------------
def dsfe_forward(x, w, gamma, beta, *, tile_n=8192, eps=1e-5, fused=None):
    """DSFE forward: Linear(64->32) -> BatchNorm1d (training-mode batch stats) -> LeakyReLU.

    x: (N, 64) f32; w: (32, 64) PyTorch-layout Linear weight; gamma, beta: (32,).
    Returns (N, 32) f32.  The Linear bias is intentionally not an input: training-mode
    BatchNorm subtracts the per-feature batch mean, so a constant bias cancels exactly.
    """
    n_rows, d_in = x.shape
    d_out = w.shape[0]

    x = x.astype(jnp.float32)
    w_t = jnp.asarray(w, jnp.float32).T                      # (d_in, d_out)
    gamma2 = jnp.asarray(gamma, jnp.float32).reshape(1, d_out)
    beta2 = jnp.asarray(beta, jnp.float32).reshape(1, d_out)

    # ---- lane-dense packing: fold `pack` rows into one packed row -------------------
    target_pack = max(1, 128 // d_out)
    pack = 1
    for cand in range(target_pack, 0, -1):
        if n_rows % cand == 0:
            pack = cand
            break
    n_packed = n_rows // pack
    packed_in = d_in * pack
    lanes = d_out * pack

    x_p = x.reshape(n_packed, packed_in)                     # free row-major reshape
    w_bd = jnp.kron(jnp.eye(pack, dtype=jnp.float32), w_t)   # (packed_in, lanes) block-diag

    # ---- tiling over packed rows -----------------------------------------------------
    tile_n = max(8 * pack, min(int(tile_n), 32768))          # cap keeps VMEM footprint sane
    tn_p = tile_n // pack
    if tn_p >= n_packed:
        tn_p = n_packed
    else:
        tn_p = min(_round_up(tn_p, 8), n_packed)
    num_tiles = pl.cdiv(n_packed, tn_p)

    # Safe on all generations (v5e default scoped limit is 16 MiB; physical VMEM >= 64 MiB).
    vmem_limit = 32 << 20

    # ---- choose fused (h resident in VMEM) vs two-pass (recompute matmul) ------------
    h_store_rows = num_tiles * tn_p
    pipeline_bytes = 8 * tn_p * (packed_in + lanes) + 8 * packed_in * lanes
    fused_bytes = 4 * h_store_rows * lanes + pipeline_bytes
    if fused is None:
        fused = fused_bytes <= (24 << 20)

    matmul_flops = 2 * n_rows * d_in * d_out

    if fused:
        out = pl.pallas_call(
            functools.partial(_fused_kernel, n_rows=n_rows, n_packed=n_packed,
                              pack=pack, d_out=d_out, eps=eps),
            out_shape=jax.ShapeDtypeStruct((n_packed, lanes), jnp.float32),
            grid=(2, num_tiles),
            in_specs=[
                pl.BlockSpec((tn_p, packed_in), lambda p, j: (j * (1 - p), 0)),
                pl.BlockSpec((packed_in, lanes), lambda p, j: (0, 0)),   # weight, resident
                pl.BlockSpec((1, d_out), lambda p, j: (0, 0)),           # gamma
                pl.BlockSpec((1, d_out), lambda p, j: (0, 0)),           # beta
            ],
            out_specs=pl.BlockSpec((tn_p, lanes), lambda p, j: (j * p, 0)),
            scratch_shapes=[
                pltpu.VMEM((h_store_rows, lanes), jnp.float32),   # resident hidden act
                pltpu.VMEM((1, lanes), jnp.float32),              # sum
                pltpu.VMEM((1, lanes), jnp.float32),              # sum of squares
                pltpu.VMEM((1, lanes), jnp.float32),              # folded scale
                pltpu.VMEM((1, lanes), jnp.float32),              # folded shift
            ],
            compiler_params=pltpu.CompilerParams(
                dimension_semantics=("arbitrary", "arbitrary"),
                vmem_limit_bytes=vmem_limit),
            cost_estimate=pl.CostEstimate(
                flops=matmul_flops + 7 * n_rows * d_out,
                transcendentals=d_out,
                bytes_accessed=4 * (n_rows * d_in + n_rows * d_out
                                    + packed_in * lanes + 2 * d_out)),
        )(x_p, w_bd, gamma2, beta2)
        return out.reshape(n_rows, d_out)

    # ---- Pass 1: batch statistics -> folded (scale, shift) ---------------------------
    scale, shift = pl.pallas_call(
        functools.partial(_stats_kernel, n_rows=n_rows, n_packed=n_packed,
                          pack=pack, d_out=d_out, eps=eps),
        out_shape=(jax.ShapeDtypeStruct((1, lanes), jnp.float32),
                   jax.ShapeDtypeStruct((1, lanes), jnp.float32)),
        grid=(num_tiles,),
        in_specs=[
            pl.BlockSpec((tn_p, packed_in), lambda i: (i, 0)),
            pl.BlockSpec((packed_in, lanes), lambda i: (0, 0)),
            pl.BlockSpec((1, d_out), lambda i: (0, 0)),
            pl.BlockSpec((1, d_out), lambda i: (0, 0)),
        ],
        out_specs=(pl.BlockSpec((1, lanes), lambda i: (0, 0)),
                   pl.BlockSpec((1, lanes), lambda i: (0, 0))),
        scratch_shapes=[pltpu.VMEM((1, lanes), jnp.float32),
                        pltpu.VMEM((1, lanes), jnp.float32)],
        compiler_params=pltpu.CompilerParams(
            dimension_semantics=("arbitrary",),
            vmem_limit_bytes=vmem_limit),
        cost_estimate=pl.CostEstimate(
            flops=matmul_flops + 4 * n_rows * d_out,
            transcendentals=d_out,
            bytes_accessed=4 * (n_rows * d_in + packed_in * lanes + 4 * lanes)),
    )(x_p, w_bd, gamma2, beta2)

    # ---- Pass 2: recompute matmul, apply normalize + LeakyReLU (megacore parallel) ----
    out = pl.pallas_call(
        _apply_kernel,
        out_shape=jax.ShapeDtypeStruct((n_packed, lanes), jnp.float32),
        grid=(num_tiles,),
        in_specs=[
            pl.BlockSpec((tn_p, packed_in), lambda i: (i, 0)),
            pl.BlockSpec((packed_in, lanes), lambda i: (0, 0)),
            pl.BlockSpec((1, lanes), lambda i: (0, 0)),
            pl.BlockSpec((1, lanes), lambda i: (0, 0)),
        ],
        out_specs=pl.BlockSpec((tn_p, lanes), lambda i: (i, 0)),
        compiler_params=pltpu.CompilerParams(
            dimension_semantics=("parallel",),
            vmem_limit_bytes=vmem_limit),
        cost_estimate=pl.CostEstimate(
            flops=matmul_flops + 3 * n_rows * d_out,
            transcendentals=0,
            bytes_accessed=4 * (n_rows * d_in + n_rows * d_out
                                + packed_in * lanes + 2 * lanes)),
    )(x_p, w_bd, scale, shift)

    return out.reshape(n_rows, d_out)


if __name__ == "__main__":
    key = jax.random.PRNGKey(0)
    k_x, k_w, k_b, k_g, k_be, k_x2 = jax.random.split(key, 6)

    def reference(x, w, b, gamma, beta, eps=1e-5):
        h = x @ w.T + b
        mu = h.mean(axis=0, keepdims=True)
        var = ((h - mu) ** 2).mean(axis=0, keepdims=True)   # biased variance = BN normalization
        y = (h - mu) / jnp.sqrt(var + eps) * gamma + beta
        return jnp.where(y >= 0, y, 0.01 * y)

    bound = 1.0 / jnp.sqrt(64.0)
    w = jax.random.uniform(k_w, (32, 64), jnp.float32, -bound, bound)     # PyTorch layout
    b = jax.random.uniform(k_b, (32,), jnp.float32, -bound, bound)        # Linear bias (cancels)
    gamma = jax.random.uniform(k_g, (32,), jnp.float32, 0.5, 1.5)
    beta = 0.1 * jax.random.normal(k_be, (32,), jnp.float32)

    # N=200: pack=4 lane-dense path. N=53 (prime): pack=1 fallback path.
    x1 = jax.random.normal(k_x, (200, 64), jnp.float32)
    x2 = jax.random.normal(k_x2, (53, 64), jnp.float32)

    cases = [
        (x1, dict()),                              # fused, pack=4, single tile
        (x1, dict(tile_n=128)),                    # fused, pack=4, multi-tile + partial tail
        (x1, dict(tile_n=128, fused=False)),       # two-pass, pack=4, multi-tile + partial tail
        (x2, dict(tile_n=16)),                     # fused, pack=1, multi-tile + partial tail
        (x2, dict(tile_n=16, fused=False)),        # two-pass, pack=1, multi-tile + partial tail
    ]

    for xin, kwargs in cases:
        out = dsfe_forward(xin, w, gamma, beta, **kwargs)
        jax.block_until_ready(out)
        y_ref = reference(xin, w, b, gamma, beta)
        assert out.shape == (xin.shape[0], 32), (out.shape, kwargs)
        assert jnp.allclose(out, y_ref, atol=1e-4, rtol=1e-4), f"mismatch vs reference: {kwargs}"

    print("KERNEL_OK")
</pallas_src>

<mosaic_0001>
module attributes {stable_mosaic.version = 11 : i64} {
  func.func @_fused_kernel(%arg0: i32, %arg1: i32, %arg2: memref<50x256xf32, #tpu.memory_space<vmem>>, %arg3: memref<256x128xf32, #tpu.memory_space<vmem>>, %arg4: memref<1x32xf32, #tpu.memory_space<vmem>>, %arg5: memref<1x32xf32, #tpu.memory_space<vmem>>, %arg6: memref<50x128xf32, #tpu.memory_space<vmem>>, %arg7: memref<50x128xf32, #tpu.memory_space<vmem>>, %arg8: memref<1x128xf32, #tpu.memory_space<vmem>>, %arg9: memref<1x128xf32, #tpu.memory_space<vmem>>, %arg10: memref<1x128xf32, #tpu.memory_space<vmem>>, %arg11: memref<1x128xf32, #tpu.memory_space<vmem>>) attributes {dimension_semantics = [#tpu.dimension_semantics<arbitrary>, #tpu.dimension_semantics<arbitrary>], iteration_bounds = array<i64: 2, 1>, scalar_prefetch = 0 : i64, scratch_operands = 5 : i64, tpu.core_type = #tpu.core_type<tc>, window_params = [{transform_indices = @transform_0, window_bounds = array<i64: 50, 256>}, {pipeline_mode = #tpu.pipeline_mode<synchronous>, transform_indices = @transform_1, window_bounds = array<i64: 256, 128>}, {pipeline_mode = #tpu.pipeline_mode<synchronous>, transform_indices = @transform_2, window_bounds = array<i64: 1, 32>}, {pipeline_mode = #tpu.pipeline_mode<synchronous>, transform_indices = @transform_3, window_bounds = array<i64: 1, 32>}, {transform_indices = @transform_4, window_bounds = array<i64: 50, 128>}]} {
    %c50_i32 = arith.constant 50 : i32
    %0 = arith.muli %arg1, %c50_i32 : i32
    %1 = tpu.assume_multiple %0, 50 : i32
    %c0_i32 = arith.constant 0 : i32
    %2 = arith.cmpi eq, %arg0, %c0_i32 : i32
    %3 = arith.extui %2 : i1 to i32
    %c0_i32_0 = arith.constant 0 : i32
    %4 = arith.cmpi ne, %3, %c0_i32_0 : i32
    scf.if %4 {
      %c0_i32_2 = arith.constant 0 : i32
      %8 = arith.cmpi eq, %arg1, %c0_i32_2 : i32
      %9 = arith.extui %8 : i1 to i32
      %c0_i32_3 = arith.constant 0 : i32
      %10 = arith.cmpi ne, %9, %c0_i32_3 : i32
      scf.if %10 {
        %cst_20 = arith.constant 0.000000e+00 : f32
        %30 = vector.broadcast %cst_20 : f32 to vector<1x128xf32>
        %c0_21 = arith.constant 0 : index
        %c0_22 = arith.constant 0 : index
        %31 = vector.load %arg8[%c0_21, %c0_22] : memref<1x128xf32, #tpu.memory_space<vmem>>, vector<1x128xf32>
        tpu.vector_store %arg8[%c0_21, %c0_22], %30 {strides = array<i32>} : memref<1x128xf32, #tpu.memory_space<vmem>>, vector<1x128xf32>,
        %cst_23 = arith.constant 0.000000e+00 : f32
        %32 = vector.broadcast %cst_23 : f32 to vector<1x128xf32>
        %c0_24 = arith.constant 0 : index
        %c0_25 = arith.constant 0 : index
        %33 = vector.load %arg9[%c0_24, %c0_25] : memref<1x128xf32, #tpu.memory_space<vmem>>, vector<1x128xf32>
        tpu.vector_store %arg9[%c0_24, %c0_25], %32 {strides = array<i32>} : memref<1x128xf32, #tpu.memory_space<vmem>>, vector<1x128xf32>,
      } else {
      }
      %c0 = arith.constant 0 : index
      %c0_4 = arith.constant 0 : index
      %11 = vector.load %arg2[%c0, %c0_4] : memref<50x256xf32, #tpu.memory_space<vmem>>, vector<50x256xf32>
      %c0_5 = arith.constant 0 : index
      %c0_6 = arith.constant 0 : index
      %12 = vector.load %arg3[%c0_5, %c0_6] : memref<256x128xf32, #tpu.memory_space<vmem>>, vector<256x128xf32>
      %cst = arith.constant dense<0.000000e+00> : vector<50x128xf32>
      %13 = tpu.matmul %11, %12, %cst {dimension_numbers = #tpu.dot_dimension_numbers<[1], [0], [0], [1], [0, 0, 1, 1], [], []>} : vector<50x256xf32>, vector<256x128xf32>, vector<50x128xf32> -> vector<50x128xf32>
      %14 = arith.index_cast %1 : i32 to index
      %c0_7 = arith.constant 0 : index
      %15 = vector.load %arg7[%14, %c0_7] : memref<50x128xf32, #tpu.memory_space<vmem>>, vector<50x128xf32>
      tpu.vector_store %arg7[%14, %c0_7], %13 {strides = array<i32>} : memref<50x128xf32, #tpu.memory_space<vmem>>, vector<50x128xf32>,
      %c0_8 = arith.constant 0 : index
      %c0_9 = arith.constant 0 : index
      %16 = vector.load %arg8[%c0_8, %c0_9] : memref<1x128xf32, #tpu.memory_space<vmem>>, vector<1x128xf32>
      %cst_10 = arith.constant dense<0.000000e+00> : vector<128xf32>
      %17 = vector.multi_reduction <add>, %13, %cst_10 [0] : vector<50x128xf32> to vector<128xf32>
      %18 = vector.shape_cast %17 : vector<128xf32> to vector<1x128xf32>
      %19 = arith.addf %16, %18 : vector<1x128xf32>
      %c0_11 = arith.constant 0 : index
      %c0_12 = arith.constant 0 : index
      %20 = vector.load %arg8[%c0_11, %c0_12] : memref<1x128xf32, #tpu.memory_space<vmem>>, vector<1x128xf32>
      tpu.vector_store %arg8[%c0_11, %c0_12], %19 {strides = array<i32>} : memref<1x128xf32, #tpu.memory_space<vmem>>, vector<1x128xf32>,
      %c0_13 = arith.constant 0 : index
      %c0_14 = arith.constant 0 : index
      %21 = vector.load %arg9[%c0_13, %c0_14] : memref<1x128xf32, #tpu.memory_space<vmem>>, vector<1x128xf32>
      %22 = arith.mulf %13, %13 : vector<50x128xf32>
      %cst_15 = arith.constant dense<0.000000e+00> : vector<128xf32>
      %23 = vector.multi_reduction <add>, %22, %cst_15 [0] : vector<50x128xf32> to vector<128xf32>
      %24 = vector.shape_cast %23 : vector<128xf32> to vector<1x128xf32>
      %25 = arith.addf %21, %24 : vector<1x128xf32>
      %c0_16 = arith.constant 0 : index
      %c0_17 = arith.constant 0 : index
      %26 = vector.load %arg9[%c0_16, %c0_17] : memref<1x128xf32, #tpu.memory_space<vmem>>, vector<1x128xf32>
      tpu.vector_store %arg9[%c0_16, %c0_17], %25 {strides = array<i32>} : memref<1x128xf32, #tpu.memory_space<vmem>>, vector<1x128xf32>,
      %c0_i32_18 = arith.constant 0 : i32
      %27 = arith.cmpi eq, %arg1, %c0_i32_18 : i32
      %28 = arith.extui %27 : i1 to i32
      %c0_i32_19 = arith.constant 0 : i32
      %29 = arith.cmpi ne, %28, %c0_i32_19 : i32
      scf.if %29 {
        %c0_20 = arith.constant 0 : index
        %c0_21 = arith.constant 0 : index
        %30 = vector.load %arg8[%c0_20, %c0_21] : memref<1x128xf32, #tpu.memory_space<vmem>>, vector<1x128xf32>
        %c0_22 = arith.constant 0 : index
        %c0_23 = arith.constant 0 : index
        %31 = vector.load %arg9[%c0_22, %c0_23] : memref<1x128xf32, #tpu.memory_space<vmem>>, vector<1x128xf32>
        %c0_24 = arith.constant 0 : index
        %c0_25 = arith.constant 0 : index
        %32 = vector.load %arg4[%c0_24, %c0_25] : memref<1x32xf32, #tpu.memory_space<vmem>>, vector<1x32xf32>
        %c0_26 = arith.constant 0 : index
        %c0_27 = arith.constant 0 : index
        %33 = vector.load %arg5[%c0_26, %c0_27] : memref<1x32xf32, #tpu.memory_space<vmem>>, vector<1x32xf32>
        %34 = vector.extract_strided_slice %30 {offsets = [0, 0], sizes = [1, 32], strides = [1, 1]} : vector<1x128xf32> to vector<1x32xf32>
        %35 = vector.extract_strided_slice %30 {offsets = [0, 32], sizes = [1, 32], strides = [1, 1]} : vector<1x128xf32> to vector<1x32xf32>
        %36 = arith.addf %34, %35 : vector<1x32xf32>
        %37 = vector.extract_strided_slice %30 {offsets = [0, 64], sizes = [1, 32], strides = [1, 1]} : vector<1x128xf32> to vector<1x32xf32>
        %38 = arith.addf %36, %37 : vector<1x32xf32>
        %39 = vector.extract_strided_slice %30 {offsets = [0, 96], sizes = [1, 32], strides = [1, 1]} : vector<1x128xf32> to vector<1x32xf32>
        %40 = arith.addf %38, %39 : vector<1x32xf32>
        %cst_28 = arith.constant 5.000000e-03 : f32
        %41 = vector.broadcast %cst_28 : f32 to vector<1x32xf32>
        %42 = arith.mulf %40, %41 : vector<1x32xf32>
        %43 = vector.extract_strided_slice %31 {offsets = [0, 0], sizes = [1, 32], strides = [1, 1]} : vector<1x128xf32> to vector<1x32xf32>
        %44 = vector.extract_strided_slice %31 {offsets = [0, 32], sizes = [1, 32], strides = [1, 1]} : vector<1x128xf32> to vector<1x32xf32>
        %45 = arith.addf %43, %44 : vector<1x32xf32>
        %46 = vector.extract_strided_slice %31 {offsets = [0, 64], sizes = [1, 32], strides = [1, 1]} : vector<1x128xf32> to vector<1x32xf32>
        %47 = arith.addf %45, %46 : vector<1x32xf32>
        %48 = vector.extract_strided_slice %31 {offsets = [0, 96], sizes = [1, 32], strides = [1, 1]} : vector<1x128xf32> to vector<1x32xf32>
        %49 = arith.addf %47, %48 : vector<1x32xf32>
        %cst_29 = arith.constant 5.000000e-03 : f32
        %50 = vector.broadcast %cst_29 : f32 to vector<1x32xf32>
        %51 = arith.mulf %49, %50 : vector<1x32xf32>
        %52 = arith.mulf %42, %42 : vector<1x32xf32>
        %53 = arith.subf %51, %52 : vector<1x32xf32>
        %cst_30 = arith.constant 0.000000e+00 : f32
        %54 = vector.broadcast %cst_30 : f32 to vector<1x32xf32>
        %55 = arith.maximumf %53, %54 : vector<1x32xf32>
        %cst_31 = arith.constant 9.99999974E-6 : f32
        %56 = vector.broadcast %cst_31 : f32 to vector<1x32xf32>
        %57 = arith.addf %55, %56 : vector<1x32xf32>
        %58 = math.rsqrt %57 : vector<1x32xf32>
        %59 = arith.mulf %32, %58 : vector<1x32xf32>
        %60 = arith.mulf %42, %59 : vector<1x32xf32>
        %61 = arith.subf %33, %60 : vector<1x32xf32>
        %62 = tpu.concatenate %59, %59, %59, %59 in 1 : vector<1x32xf32>, vector<1x32xf32>, vector<1x32xf32>, vector<1x32xf32> -> vector<1x128xf32>
        %63 = tpu.concatenate %61, %61, %61, %61 in 1 : vector<1x32xf32>, vector<1x32xf32>, vector<1x32xf32>, vector<1x32xf32> -> vector<1x128xf32>
        %c0_32 = arith.constant 0 : index
        %c0_33 = arith.constant 0 : index
        %64 = vector.load %arg10[%c0_32, %c0_33] : memref<1x128xf32, #tpu.memory_space<vmem>>, vector<1x128xf32>
        tpu.vector_store %arg10[%c0_32, %c0_33], %62 {strides = array<i32>} : memref<1x128xf32, #tpu.memory_space<vmem>>, vector<1x128xf32>,
        %c0_34 = arith.constant 0 : index
        %c0_35 = arith.constant 0 : index
        %65 = vector.load %arg11[%c0_34, %c0_35] : memref<1x128xf32, #tpu.memory_space<vmem>>, vector<1x128xf32>
        tpu.vector_store %arg11[%c0_34, %c0_35], %63 {strides = array<i32>} : memref<1x128xf32, #tpu.memory_space<vmem>>, vector<1x128xf32>,
      } else {
      }
    } else {
    }
    %c1_i32 = arith.constant 1 : i32
    %5 = arith.cmpi eq, %arg0, %c1_i32 : i32
    %6 = arith.extui %5 : i1 to i32
    %c0_i32_1 = arith.constant 0 : i32
    %7 = arith.cmpi ne, %6, %c0_i32_1 : i32
    scf.if %7 {
      %8 = arith.index_cast %1 : i32 to index
      %c0 = arith.constant 0 : index
      %9 = vector.load %arg7[%8, %c0] : memref<50x128xf32, #tpu.memory_space<vmem>>, vector<50x128xf32>
      %c0_2 = arith.constant 0 : index
      %c0_3 = arith.constant 0 : index
      %10 = vector.load %arg10[%c0_2, %c0_3] : memref<1x128xf32, #tpu.memory_space<vmem>>, vector<1x128xf32>
      %11 = vector.broadcast %10 : vector<1x128xf32> to vector<50x128xf32>
      %12 = arith.mulf %9, %11 : vector<50x128xf32>
      %c0_4 = arith.constant 0 : index
      %c0_5 = arith.constant 0 : index
      %13 = vector.load %arg11[%c0_4, %c0_5] : memref<1x128xf32, #tpu.memory_space<vmem>>, vector<1x128xf32>
      %14 = vector.broadcast %13 : vector<1x128xf32> to vector<50x128xf32>
      %15 = arith.addf %12, %14 : vector<50x128xf32>
      %cst = arith.constant 0.000000e+00 : f32
      %16 = vector.broadcast %cst : f32 to vector<50x128xf32>
      %17 = arith.cmpf oge, %15, %16 : vector<50x128xf32>
      %cst_6 = arith.constant 0.00999999977 : f32
      %18 = vector.broadcast %cst_6 : f32 to vector<50x128xf32>
      %19 = arith.mulf %18, %15 : vector<50x128xf32>
      %20 = arith.select %17, %15, %19 : vector<50x128xi1>, vector<50x128xf32>
      %c0_7 = arith.constant 0 : index
      %c0_8 = arith.constant 0 : index
      %21 = vector.load %arg6[%c0_7, %c0_8] : memref<50x128xf32, #tpu.memory_space<vmem>>, vector<50x128xf32>
      tpu.vector_store %arg6[%c0_7, %c0_8], %20 {strides = array<i32>} : memref<50x128xf32, #tpu.memory_space<vmem>>, vector<50x128xf32>,
    } else {
    }
    return
  }
  func.func @transform_0(%arg0: i32, %arg1: i32) -> (i32, i32) {
    %c1_i32 = arith.constant 1 : i32
    %0 = arith.subi %c1_i32, %arg0 : i32
    %1 = arith.muli %arg1, %0 : i32
    %c0_i32 = arith.constant 0 : i32
    %c0_i32_0 = arith.constant 0 : i32
    return %1, %c0_i32 : i32, i32
  }
  func.func @transform_1(%arg0: i32, %arg1: i32) -> (i32, i32) {
    %c0_i32 = arith.constant 0 : i32
    %c0_i32_0 = arith.constant 0 : i32
    %c0_i32_1 = arith.constant 0 : i32
    return %c0_i32, %c0_i32_0 : i32, i32
  }
  func.func @transform_2(%arg0: i32, %arg1: i32) -> (i32, i32) {
    %c0_i32 = arith.constant 0 : i32
    %c0_i32_0 = arith.constant 0 : i32
    %c0_i32_1 = arith.constant 0 : i32
    return %c0_i32, %c0_i32_0 : i32, i32
  }
  func.func @transform_3(%arg0: i32, %arg1: i32) -> (i32, i32) {
    %c0_i32 = arith.constant 0 : i32
    %c0_i32_0 = arith.constant 0 : i32
    %c0_i32_1 = arith.constant 0 : i32
    return %c0_i32, %c0_i32_0 : i32, i32
  }
  func.func @transform_4(%arg0: i32, %arg1: i32) -> (i32, i32) {
    %0 = arith.muli %arg1, %arg0 : i32
    %c0_i32 = arith.constant 0 : i32
    %c0_i32_0 = arith.constant 0 : i32
    return %0, %c0_i32 : i32, i32
  }
}

</mosaic_0001>

<bundles_post_ra>
// kernel: tpu_custom_call.1
= control target key start
LH: loop header
LB: loop body
LE: loop exit
PB: predicated region body
PF: predicated region fallthrough
CT: control target
= control target key end

     0   :  { %9 = vsyncpa [#allocation8], 0  ;;  %s1166_s0 = inlined_call_operand.hbm [shape: f32[50,256], index: 0, kind: input, shape index: {}]   ;;  %s1167_s1 = inlined_call_operand.hbm [shape: f32[256,128], index: 1, kind: input, shape index: {}]   ;;  %s1168_s2 = inlined_call_operand.vmem [shape: f32[1,32], index: 2, kind: input, shape index: {}]   ;;  %s1169_s3 = inlined_call_operand.vmem [shape: f32[1,32], index: 3, kind: input, shape index: {}]   ;;  %s1170_s4 = inlined_call_operand.hbm [shape: f32[50,128], index: 4, kind: output, shape index: {}]  }
   0x1   :  { %11 = vsyncpa [#allocation8 + $0x1], 0 }
   0x2   :  { %12 = vsyncpa [#allocation11], 0 }
   0x3   :  { %13 = vsyncpa [#allocation9], 0 }
   0x4   :  { %15 = vsyncpa [#allocation9 + $0x1], 0  ;;  %s1045_s15 = smov 0   ;;  %s1047_s16 = smov 0  }
   0x5   :  { %s1049_s17 = smov 0  }
   0x6 LB: > { %s722_s18 = sadd.s32 4294967295, %s1005_s17   ;;  %s723_s19 = sadd.s32 4294967294, %s1005_s17   ;;  %s1005_s17 = sphi %s1049_s17, %s21_s17   ;;  %s1001_s16 = sphi %s1047_s16, %s1179_s16   ;;  %s997_s15 = sphi %s1045_s15, %s1178_s15  }
   0x7   : > { %s33_s20 = sadd.s32 1, %s1001_s16  ;;  %p724_p0 = scmp.ge.s32.totalorder %s1005_s17, 1 }
   0x8   : > { %p35_p1 = scmp.ge.s32.totalorder %s33_s20, 2  ;;  %p159_p2 = scmp.lt.s32.totalorder %s1005_s17, 3 }
   0x9   : > { %p1067_p3 = scmp.eq.s32.totalorder %s722_s18, 0  ;;  %s1007_s23 = smov [#allocation10]  }
   0xa   : > { %s1181_s20 = smov (%p35_p1, %s33_s20), 0  ;;  %p1073_p4 = pnand %p724_p0, %p159_p2 }
   0xb   : > { %s171_s24 = sshll.u32 %s1007_s23, 4  ;;  %p726_p6 = scmp.ge.s32.totalorder %s1005_s17, 2  ;;  %s172_s24 = int_to_ptr.vmem [resolvable:$true] %s171_s24 }
   0xc   : > { %s1173_s22 = scalar_select %p1073_p4, 1, 0 }
   0xd   : > { %p836_p5 = pneg %p1073_p4  ;;  %p849_p8 = scmp.lt.s32.totalorder %s1005_s17, 2 }
   0xe   : > { %p850_p9 = scmp.eq.s32.totalorder %s1005_s17, 0  ;;  %s906_s26 = scalar_lea.vmem %s172_s24, 4096 }
   0xf   : > { %p1082_p7 = pnand %p1067_p3, %p836_p5  ;;  %p907_p11 = scmp.ne.s32.totalorder %s172_s24, %s906_s26 }
  0x10   : > { %p914_p0 = scmp.lt.s32.totalorder %s172_s24, %s172_s24  ;;  %p915_p1 = scmp.lt.s32.totalorder %s906_s26, %s906_s26 }
  0x11   : > { %p897_p10 = pneg %p1082_p7 }
  0x12   : > { %p916_p2 = por %p915_p1, %p914_p0 }
  0x13   : > { %p909_p12 = pnand %p907_p11, %p897_p10 }
  0x15   : > { %p910_p13 = pneg %p909_p12 }
  0x17   : > { %p917_p4 = pnand %p916_p2, %p910_p13 }
  0x19   : > { %920 = shalt.err (!%p917_p4)
}
  0x1a   : > { %s1008_s27 = smov 128   ;;  %s1009_s28 = smov 8  }
  0x1b   : > { %839 = dma.hbm_to_vmem [thread:$0]  (!%p1082_p7), %s1167_s1, 4096, %s172_s24, [#allocation11], %s1008_s27, %s1008_s27, %s1009_s28  }
  0x1c   : > { %s1010_s5 = smov [#allocation7]   ;;  %p1099_p5 = pnand %p850_p9, %p849_p8 }
  0x1d   : > { %s205_s6 = sshll.u32 %s1010_s5, 4  ;;  %s206_s6 = int_to_ptr.vmem [resolvable:$true] %s205_s6 }
  0x1e   : > { %p923_p4 = pneg %p1099_p5  ;;  %s932_s8 = scalar_lea.vmem %s206_s6, 1792 }
  0x1f   : > { %p933_p10 = scmp.ne.s32.totalorder %s206_s6, %s932_s8  ;;  %s939_s9 = scalar_lea.vmem %s206_s6, 3584 }
  0x20   : > { %p940_p13 = scmp.lt.s32.totalorder %s206_s6, %s206_s6  ;;  %p941_p0 = scmp.lt.s32.totalorder %s939_s9, %s932_s8 }
  0x21   : > { %p935_p11 = pnand %p933_p10, %p923_p4 }
  0x22   : > { %p942_p7 = por %p941_p0, %p940_p13 }
  0x23   : > { %p936_p12 = pneg %p935_p11 }
  0x25   : > { %p943_p1 = pnand %p942_p7, %p936_p12 }
  0x27   : > { %946 = shalt.err (!%p943_p1)
}
  0x28   : > { %s1011_s10 = smov 256   ;;  %s1012_s11 = smov 16  }
  0x29   : > { %843 = dma.hbm_to_vmem [thread:$0]  (!%p1099_p5), %s1166_s0, 1792, %s206_s6, [#allocation8], %s1011_s10, %s1011_s10, %s1012_s11  }
  0x2a   : > { %p1176_p8 = scmp.ne.s32.totalorder %s1173_s22, 0 }
  0x2c   : > { %217 = sbr.rel (%p1176_p8) target bundleno = 649 (0x289), region = 36 }
  0x31   : > { %984 = dma.done.wait (%p1067_p3), [#allocation8], 1792  }
  0x32   : > { %986 = vsyncadd (%p1067_p3), [#allocation8], 4294965504 }
  0x33   : > { %988 = dma.done.wait (%p1067_p3), [#allocation11], 4096  }
  0x34   : > { %990 = vsyncadd (%p1067_p3), [#allocation11], 4294963200  ;;  %p731_p9 = scmp.ne.s32.totalorder %s997_s15, 0 }
  0x35   : > { %s1014_s14 = smov (!%p731_p9), 32   ;;  %s1015_s21 = smov (!%p731_p9), 96  }
  0x36   : > { %261 = sbr.rel (%p731_p9) target bundleno = 613 (0x265), region = 48  ;;  %s1016_s22 = smov (!%p731_p9), 64  }
  0x3b   : > { %v313_v0 = vld [vmem:[#allocation10 + $0xf8] sm:$0xff]  ;;  %v312_v2 = vld [vmem:[#allocation10 + $0xf0] sm:$0xff]  ;;  %v311_v4 = vld [vmem:[#allocation10 + $0xe8] sm:$0xff]  ;;  %v1013_v46 = vmov 0.0   ;;  %vm428_vm0 = vcmask 1041408   ;;  %vm519_vm1 = vcmask 261120  }
  0x3c   : > { %v297_v1 = vld [vmem:[#allocation10 + $0x78] sm:$0xff]  ;;  %739 = vmatprep.subr.mxu0 %v313_v0  ;;  %v296_v3 = vld [vmem:[#allocation10 + $0x70] sm:$0xff]  ;;  %792 = vmatprep.subr.mxu1 %v313_v0  ;;  %v295_v5 = vld [vmem:[#allocation10 + $0x68] sm:$0xff]  ;;  %266 = vst [vmem:[#allocation3] sm:$0x1] %v1013_v46  ;;  %vm521_vm2 = vcmask 523264  }
  0x3d   : > { %740 = vmatpush3.msra.mxu0 %v297_v1  ;;  %808 = vmatpush3.msra.mxu1 %v297_v1  ;;  %v310_v6 = vld [vmem:[#allocation10 + $0xe0] sm:$0xff]  ;;  %v309_v8 = vld [vmem:[#allocation10 + $0xd8] sm:$0xff]  ;;  %v308_v10 = vld [vmem:[#allocation10 + $0xd0] sm:$0xff]  ;;  %267 = vst [vmem:[#allocation4] sm:$0x1] %v1013_v46  ;;  %vm523_vm3 = vcmask 785408  }
  0x3e   : > { %741 = vmatprep.subr.mxu0 %v312_v2  ;;  %793 = vmatprep.subr.mxu1 %v312_v2  ;;  %v294_v7 = vld [vmem:[#allocation10 + $0x60] sm:$0xff]  ;;  %v293_v9 = vld [vmem:[#allocation10 + $0x58] sm:$0xff]  ;;  %v292_v11 = vld [vmem:[#allocation10 + $0x50] sm:$0xff] }
  0x3f   : > { %742 = vmatpush3.msra.mxu0 %v296_v3  ;;  %809 = vmatpush3.msra.mxu1 %v296_v3  ;;  %v307_v12 = vld [vmem:[#allocation10 + $0xc8] sm:$0xff]  ;;  %v306_v14 = vld [vmem:[#allocation10 + $0xc0] sm:$0xff]  ;;  %v305_v16 = vld [vmem:[#allocation10 + $0xb8] sm:$0xff] }
  0x40   : > { %743 = vmatprep.subr.mxu0 %v311_v4  ;;  %794 = vmatprep.subr.mxu1 %v311_v4  ;;  %v291_v13 = vld [vmem:[#allocation10 + $0x48] sm:$0xff]  ;;  %v290_v15 = vld [vmem:[#allocation10 + $0x40] sm:$0xff]  ;;  %v289_v17 = vld [vmem:[#allocation10 + $0x38] sm:$0xff] }
  0x41   : > { %744 = vmatpush3.msra.mxu0 %v295_v5  ;;  %810 = vmatpush3.msra.mxu1 %v295_v5  ;;  %v304_v18 = vld [vmem:[#allocation10 + $0xb0] sm:$0xff]  ;;  %v303_v20 = vld [vmem:[#allocation10 + $0xa8] sm:$0xff]  ;;  %v302_v22 = vld [vmem:[#allocation10 + $0xa0] sm:$0xff] }
  0x42   : > { %745 = vmatprep.subr.mxu0 %v310_v6  ;;  %795 = vmatprep.subr.mxu1 %v310_v6  ;;  %v288_v19 = vld [vmem:[#allocation10 + $0x30] sm:$0xff]  ;;  %v287_v21 = vld [vmem:[#allocation10 + $0x28] sm:$0xff]  ;;  %v286_v23 = vld [vmem:[#allocation10 + $0x20] sm:$0xff] }
  0x43   : > { %746 = vmatpush3.msra.mxu0 %v294_v7  ;;  %811 = vmatpush3.msra.mxu1 %v294_v7  ;;  %v301_v24 = vld [vmem:[#allocation10 + $0x98] sm:$0xff]  ;;  %v269_v26 = vld [vmem:[#allocation7 + $0x8] sm:$0xff]  ;;  %v300_v27 = vld [vmem:[#allocation10 + $0x90] sm:$0xff] }
  0x44   : > { %747 = vmatprep.subr.mxu0 %v309_v8  ;;  %796 = vmatprep.subr.mxu1 %v309_v8  ;;  %v285_v25 = vld [vmem:[#allocation10 + $0x18] sm:$0xff]  ;;  %v284_v28 = vld [vmem:[#allocation10 + $0x10] sm:$0xff]  ;;  %v299_v29 = vld [vmem:[#allocation10 + $0x88] sm:$0xff] }
  0x45   : > { %748 = vmatpush3.msra.mxu0 %v293_v9  ;;  %812 = vmatpush3.msra.mxu1 %v293_v9  ;;  %v283_v30 = vld [vmem:[#allocation10 + $0x8] sm:$0xff]  ;;  %v298_v31 = vld [vmem:[#allocation10 + $0x80] sm:$0xff]  ;;  %v271_v34 = vld [vmem:[#allocation7 + $0x18] sm:$0xff] }
  0x46   : > { %749 = vmatprep.subr.mxu0 %v308_v10  ;;  %797 = vmatprep.subr.mxu1 %v308_v10  ;;  %v282_v32 = vld [vmem:[#allocation10] sm:$0xff]  ;;  %v277_v35 = vld [vmem:[#allocation7 + $0x48] sm:$0xff]  ;;  %v279_v37 = vld [vmem:[#allocation7 + $0x58] sm:$0xff] }
  0x47   : > { %750 = vmatpush3.msra.mxu0 %v292_v11  ;;  %813 = vmatpush3.msra.mxu1 %v292_v11  ;;  %v268_v33 = vld [vmem:[#allocation7] sm:$0xff]  ;;  %v270_v38 = vld [vmem:[#allocation7 + $0x10] sm:$0xff]  ;;  %v273_v39 = vld [vmem:[#allocation7 + $0x28] sm:$0xff] }
  0x48   : > { %751 = vmatprep.subr.mxu0 %v307_v12  ;;  %798 = vmatprep.subr.mxu1 %v307_v12  ;;  %v276_v36 = vld [vmem:[#allocation7 + $0x40] sm:$0xff]  ;;  %v278_v40 = vld [vmem:[#allocation7 + $0x50] sm:$0xff]  ;;  %v281_v41 = vld [vmem:[#allocation7 + $0x68] sm:$0x3] }
  0x49   : > { %752 = vmatpush3.msra.mxu0 %v291_v13  ;;  %814 = vmatpush3.msra.mxu1 %v291_v13  ;;  %v272_v42 = vld [vmem:[#allocation7 + $0x20] sm:$0xff]  ;;  %v275_v43 = vld [vmem:[#allocation7 + $0x38] sm:$0xff]  ;;  %v274_v45 = vld [vmem:[#allocation7 + $0x30] sm:$0xff] }
  0x4a   : > { %753 = vmatprep.subr.mxu0 %v306_v14  ;;  %799 = vmatprep.subr.mxu1 %v306_v14  ;;  %v280_v44 = vld [vmem:[#allocation7 + $0x60] sm:$0x3] }
  0x4b   : > { %754 = vmatpush3.msra.mxu0 %v290_v15  ;;  %815 = vmatpush3.msra.mxu1 %v290_v15 }
  0x4c   : > { %755 = vmatprep.subr.mxu0 %v305_v16  ;;  %800 = vmatprep.subr.mxu1 %v305_v16 }
  0x4d   : > { %756 = vmatpush3.msra.mxu0 %v289_v17  ;;  %816 = vmatpush3.msra.mxu1 %v289_v17 }
  0x4e   : > { %757 = vmatprep.subr.mxu0 %v304_v18  ;;  %801 = vmatprep.subr.mxu1 %v304_v18 }
  0x4f   : > { %758 = vmatpush3.msra.mxu0 %v288_v19  ;;  %817 = vmatpush3.msra.mxu1 %v288_v19 }
  0x50   : > { %759 = vmatprep.subr.mxu0 %v303_v20  ;;  %802 = vmatprep.subr.mxu1 %v303_v20 }
  0x51   : > { %760 = vmatpush3.msra.mxu0 %v287_v21  ;;  %818 = vmatpush3.msra.mxu1 %v287_v21 }
  0x52   : > { %761 = vmatprep.subr.mxu0 %v302_v22  ;;  %803 = vmatprep.subr.mxu1 %v302_v22 }
  0x53   : > { %762 = vmatpush3.msra.mxu0 %v286_v23  ;;  %819 = vmatpush3.msra.mxu1 %v286_v23 }
  0x54   : > { %763 = vmatprep.subr.mxu0 %v301_v24  ;;  %804 = vmatprep.subr.mxu1 %v301_v24 }
  0x55   : > { %764 = vmatpush3.msra.mxu0 %v285_v25  ;;  %378 = vmatprep.mubr.f32.mxu0 %v269_v26 }
  0x56   : > { %765 = vmatprep.subr.mxu0 %v300_v27  ;;  %820 = vmatpush3.msra.mxu1 %v285_v25 }
  0x57   : > { %766 = vmatpush3.msra.mxu0 %v284_v28  ;;  %805 = vmatprep.subr.mxu1 %v300_v27 }
  0x58   : > { %767 = vmatprep.subr.mxu0 %v299_v29  ;;  %821 = vmatpush3.msra.mxu1 %v284_v28 }
  0x59   : > { %768 = vmatpush3.msra.mxu0 %v283_v30  ;;  %806 = vmatprep.subr.mxu1 %v299_v29 }
  0x5a   : > { %769 = vmatprep.subr.mxu0 %v298_v31  ;;  %822 = vmatpush3.msra.mxu1 %v283_v30 }
  0x5b   : > { %770 = vmatpush3.msra.mxu0 %v282_v32  ;;  %807 = vmatprep.subr.mxu1 %v298_v31 }
  0x5c   : > { %379 = vmatmul.mubr.f32.vlgmr.msra.gmra.mxu0 %v268_v33  ;;  %823 = vmatpush3.msra.mxu1 %v282_v32 }
  0x5d   : > { %383 = vmatprep.mubr.f32.mxu0 %v271_v34  ;;  %398 = vmatprep.mubr.f32.mxu1 %v277_v35  ;;  %v422_v34 = vld [vmem:[#allocation3] sm:$0x1] }
  0x5e   : > { %399 = vmatmul.mubr.f32.vlgmr.msra.gmra.mxu1 %v276_v36 }
  0x5f   : > { %403 = vmatprep.mubr.f32.mxu1 %v279_v37  ;;  %v439_v37 = vld [vmem:[#allocation4] sm:$0x1] }
  0x60   : > { %384 = vmatmul.mubr.f32.gmra.mxu0 %v270_v38 }
  0x61   : > { %388 = vmatprep.mubr.f32.mxu0 %v273_v39 }
  0x62   : > { %404 = vmatmul.mubr.f32.gmra.mxu1 %v278_v40 }
  0x63   : > { %408 = vmatprep.mubr.f32.mxu1 %v281_v41 }
  0x64   : > { %389 = vmatmul.mubr.f32.gmra.mxu0 %v272_v42 }
  0x65   : > { %393 = vmatprep.mubr.f32.mxu0 %v275_v43 }
  0x66   : > { %409 = vmatmul.mubr.f32.gmra.mxu1 %v280_v44 }
  0x68   : > { %394 = vmatmul.mubr.f32.gmra.mxu0 %v274_v45 }
 0x11c   : > { %v771_v47 = vpop.f32.mrf.mxu0 }
 0x11e   : > { %v772_v48 = vpop.f32.mrf.mxu0  ;;  %v783_v49 = vpop.f32.mrf.mxu1 }
 0x11f   : > { %v773_v50 = vadd.f32 %v772_v48, %v771_v47 }
 0x120   : > { %v774_v51 = vpop.f32.mrf.mxu0  ;;  %v784_v52 = vpop.f32.mrf.mxu1 }
 0x121   : > { %415 = vst [vmem:[#allocation2 + $0x30] sm:$0xff] %v773_v50  ;;  %v785_v53 = vadd.f32 %v784_v52, %v783_v49  ;;  %v440_v2 = vmul.f32 %v773_v50, %v773_v50 }
 0x122   : > { %v775_v54 = vpop.f32.mrf.mxu0  ;;  %v786_v55 = vpop.f32.mrf.mxu1 }
 0x123   : > { %v776_v56 = vadd.f32 %v775_v54, %v774_v51  ;;  %419 = vst [vmem:[#allocation2 + $0x8] sm:$0xff] %v785_v53  ;;  %v444_v13 = vmul.f32 %v785_v53, %v785_v53 }
 0x124   : > { %v777_v57 = vpop.f32.mrf.mxu0  ;;  %v787_v58 = vpop.f32.mrf.mxu1 }
 0x125   : > { %416 = vst [vmem:[#allocation2] sm:$0xff] %v776_v56  ;;  %v788_v59 = vadd.f32 %v787_v58, %v786_v55  ;;  %v441_v62 = vmul.f32 %v776_v56, %v776_v56  ;;  %v423_v3 = vadd.f32 %v776_v56, %v773_v50 }
 0x126   : > { %v778_v60 = vpop.f32.mrf.mxu0  ;;  %v789_v61 = vpop.f32.mrf.mxu1 }
 0x127   : > { %v779_v63 = vadd.f32 %v778_v60, %v777_v57  ;;  %420 = vst [vmem:[#allocation2 + $0x20] sm:$0xff] %v788_v59  ;;  %v447_v7 = vadd.f32 %v441_v62, %v440_v2  ;;  %v445_v17 = vmul.f32 %v788_v59, %v788_v59 }
 0x128   : > { %v780_v0 = vpop.f32.mrf.mxu0  ;;  %v790_v1 = vpop.f32.mrf.mxu1 }
 0x129   : > { %417 = vst [vmem:[#allocation2 + $0x18] sm:$0xff] %v779_v63  ;;  %v442_v4 = vmul.f32 %v779_v63, %v779_v63  ;;  %v791_v5 = vadd.f32 %v790_v1, %v789_v61  ;;  %v424_v8 = vadd.f32 %v779_v63, %v423_v3  ;;  %v506_v61 = vlaneseq  ;;  %v467_v63 = vld [vmem:[%s1168_s2] sm:$0x1] }
 0x12a   : > { %v781_v6 = vpop.f32.mrf.mxu0  ;;  %v468_v3 = vld [vmem:[%s1169_s3] sm:$0x1] }
 0x12b   : > { %v782_v9 = vadd.f32 %v781_v6, %v780_v0  ;;  %421 = vst [vmem:[#allocation2 + $0x28] sm:$0x3] %v791_v5  ;;  %v448_v10 = vadd.f32 %v447_v7, %v442_v4  ;;  %v446_v16 = vmul.f32 %v791_v5, %v791_v5  ;;  %v429_v20 = vsel %vm428_vm0, %v791_v5, 0.0 }
 0x12c   : > { %v507_v62 = vshrl.u32 %v506_v61, 7 }
 0x12d   : > { %418 = vst [vmem:[#allocation2 + $0x10] sm:$0xff] %v782_v9  ;;  %v425_v11 = vadd.f32 %v782_v9, %v424_v8  ;;  %v443_v12 = vmul.f32 %v782_v9, %v782_v9  ;;  %v452_v23 = vsel %vm428_vm0, %v446_v16, 0.0 }
 0x12e   : > { %v508_v0 = vsub.s32 0, %v507_v62 }
 0x12f   : > { %v426_v14 = vadd.f32 %v785_v53, %v425_v11  ;;  %v449_v15 = vadd.f32 %v448_v10, %v443_v12 }
 0x131   : > { %v450_v18 = vadd.f32 %v449_v15, %v444_v13  ;;  %v427_v19 = vadd.f32 %v788_v59, %v426_v14 }
 0x133   : > { %v430_v21 = vadd.f32 %v429_v20, %v427_v19  ;;  %v451_v22 = vadd.f32 %v450_v18, %v445_v17 }
 0x135   : > { %v431_v24 = vrot.slane %v430_v21, 4  ;;  %v453_v25 = vadd.f32 %v452_v23, %v451_v22 }
 0x137   : > { %v432_v26 = vadd.f32 %v431_v24, %v430_v21  ;;  %v454_v27 = vrot.slane %v453_v25, 4 }
 0x139   : > { %v433_v28 = vrot.slane %v432_v26, 2  ;;  %v455_v29 = vadd.f32 %v454_v27, %v453_v25 }
 0x13b   : > { %v434_v30 = vadd.f32 %v433_v28, %v432_v26  ;;  %v456_v31 = vrot.slane %v455_v29, 2 }
 0x13d   : > { %v435_v32 = vrot.slane %v434_v30, 1  ;;  %v457_v33 = vadd.f32 %v456_v31, %v455_v29 }
 0x13f   : > { %v436_v35 = vadd.f32 %v435_v32, %v434_v30  ;;  %v458_v36 = vrot.slane %v457_v33, 1 }
 0x141   : > { %v437_v38 = vadd.f32 %v436_v35, %v422_v34  ;;  %v459_v39 = vadd.f32 %v458_v36, %v457_v33 }
 0x143   : > { %438 = vst [vmem:[#allocation3] sm:$0x1] %v437_v38  ;;  %v460_v40 = vadd.f32 %v459_v39, %v439_v37 }
 0x145   : > { %461 = vst [vmem:[#allocation4] sm:$0x1] %v460_v40 }
 0x14a   : > { %v465_v41 = vld [vmem:[#allocation3] sm:$0x1] }
 0x14b   : > { %478 = vrot.lane.b32.xlu1 %v465_v41, %s1014_s14  ;;  %470 = vrot.lane.b32.xlu0 %v465_v41, %s1015_s21 }
 0x14c   : > { %v466_v42 = vld [vmem:[#allocation4] sm:$0x1] }
 0x14f   : > { %484 = vrot.lane.b32.xlu1 %v466_v42, %s1015_s21  ;;  %474 = vrot.lane.b32.xlu0 %v465_v41, %s1016_s22 }
 0x153   : > { %492 = vrot.lane.b32.xlu1 %v466_v42, %s1014_s14  ;;  %488 = vrot.lane.b32.xlu0 %v466_v42, %s1016_s22 }
 0x1bd   : > { %v479_v43 = vpop.permute.xlu1 %478  ;;  %v471_v44 = vpop.permute.xlu0 %470 }
 0x1be   : > { %v473_v45 = vadd.f32 %v471_v44, %v465_v41 }
 0x1c1   : > { %v485_v46 = vpop.permute.xlu1 %484  ;;  %v475_v47 = vpop.permute.xlu0 %474 }
 0x1c2   : > { %v477_v48 = vadd.f32 %v475_v47, %v473_v45  ;;  %v487_v49 = vadd.f32 %v485_v46, %v466_v42 }
 0x1c4   : > { %v481_v50 = vadd.f32 %v479_v43, %v477_v48 }
 0x1c5   : > { %v489_v51 = vpop.permute.xlu0 %488  ;;  %v493_v54 = vpop.permute.xlu1 %492 }
 0x1c6   : > { %v482_v52 = vmul.f32 0.005, %v481_v50  ;;  %v491_v53 = vadd.f32 %v489_v51, %v487_v49 }
 0x1c8   : > { %v495_v55 = vadd.f32 %v493_v54, %v491_v53  ;;  %v497_v56 = vmul.f32 %v482_v52, %v482_v52 }
 0x1ca   : > { %v496_v57 = vmul.f32 0.005, %v495_v55 }
 0x1cc   : > { %v498_v58 = vsub.f32 %v496_v57, %v497_v56 }
 0x1ce   : > { %v499_v59 = vmax.f32 %v498_v58, 0.0 }
 0x1d0   : > { %v500_v60 = vadd.f32 1e-05, %v499_v59 }
 0x1d2   : > { %893 = vrsqrt.f32 %v500_v60 }
 0x1df   : > { %v894_v1 = vpop.eup %893 }
 0x1e0   : > { %v502_v2 = vmul.f32 %v894_v1, %v467_v63 }
 0x1e2   : > { %v509_v4 = vrot.slane %v502_v2, %v508_v0  ;;  %v503_v5 = vmul.f32 %v502_v2, %v482_v52 }
 0x1e4   : > { %510 = vrot.lane.b32.xlu0 %v509_v4, %s1014_s14  ;;  %v504_v6 = vsub.f32 %v468_v3, %v503_v5 }
 0x1e6   : > { %v529_v7 = vrot.slane %v504_v6, %v508_v0 }
 0x1e8   : > { %513 = vrot.lane.b32.xlu0 %v509_v4, %s1016_s22  ;;  %530 = vrot.lane.b32.xlu1 %v529_v7, %s1014_s14 }
 0x1ec   : > { %516 = vrot.lane.b32.xlu0 %v509_v4, %s1015_s21  ;;  %533 = vrot.lane.b32.xlu1 %v529_v7, %s1016_s22 }
 0x1f0   : > { %536 = vrot.lane.b32.xlu1 %v529_v7, %s1015_s21 }
 0x256   : > { %v511_v8 = vpop.permute.xlu0 %510 }
 0x257   : > { %v520_v11 = vsel %vm519_vm1, %v502_v2, %v511_v8 }
 0x25a   : > { %v514_v9 = vpop.permute.xlu0 %513  ;;  %v531_v10 = vpop.permute.xlu1 %530 }
 0x25b   : > { %v522_v12 = vsel %vm521_vm2, %v520_v11, %v514_v9  ;;  %v539_v16 = vsel %vm519_vm1, %v504_v6, %v531_v10 }
 0x25e   : > { %v517_v13 = vpop.permute.xlu0 %516  ;;  %v534_v14 = vpop.permute.xlu1 %533 }
 0x25f   : > { %v524_v15 = vsel %vm523_vm3, %v522_v12, %v517_v13  ;;  %v540_v17 = vsel %vm521_vm2, %v539_v16, %v534_v14 }
 0x260   : > { %542 = vst [vmem:[#allocation5] sm:$0x1] %v524_v15 }
 0x262   : > { %v537_v18 = vpop.permute.xlu1 %536 }
 0x263   : > { %v541_v19 = vsel %vm523_vm3, %v540_v17, %v537_v18 }
 0x264   : > { %543 = vst [vmem:[#allocation6] sm:$0x1] %v541_v19 }
 0x265 PF: > { %p732_p3 = scmp.ne.s32.totalorder %s997_s15, 1 }
 0x267   : > { %547 = sbr.rel (%p732_p3) target bundleno = 635 (0x27b), region = 60 }
 0x26c   : > { %v549_v20 = vld [vmem:[#allocation2 + $0x30] sm:$0xff]  ;;  %v733_v21 = vld [vmem:[#allocation5] ss:$0 sm:$0xff]  ;;  %v734_v22 = vld [vmem:[#allocation6] ss:$0 sm:$0xff] }
 0x26d   : > { %v563_v23 = vmul.f32 %v733_v21, %v549_v20  ;;  %v550_v24 = vld [vmem:[#allocation2] sm:$0xff]  ;;  %v551_v25 = vld [vmem:[#allocation2 + $0x18] sm:$0xff]  ;;  %v552_v26 = vld [vmem:[#allocation2 + $0x10] sm:$0xff] }
 0x26e   : > { %v564_v27 = vmul.f32 %v733_v21, %v550_v24  ;;  %v565_v28 = vmul.f32 %v733_v21, %v551_v25  ;;  %v566_v29 = vmul.f32 %v733_v21, %v552_v26  ;;  %v553_v30 = vld [vmem:[#allocation2 + $0x8] sm:$0xff]  ;;  %v554_v31 = vld [vmem:[#allocation2 + $0x20] sm:$0xff] }
 0x26f   : > { %v555_v32 = vld [vmem:[#allocation2 + $0x28] sm:$0x3]  ;;  %v577_v33 = vadd.f32 %v734_v22, %v563_v23  ;;  %v567_v34 = vmul.f32 %v733_v21, %v553_v30  ;;  %v568_v35 = vmul.f32 %v733_v21, %v554_v31 }
 0x270   : > { %v578_v36 = vadd.f32 %v734_v22, %v564_v27  ;;  %v579_v37 = vadd.f32 %v734_v22, %v565_v28  ;;  %v580_v38 = vadd.f32 %v734_v22, %v566_v29  ;;  %v569_v39 = vmul.f32 %v733_v21, %v555_v32 }
 0x271   : > { %vm584_vm4 = vcmp.ge.f32.partialorder %v577_v33, 0.0  ;;  %v591_v40 = vmul.f32 0.01, %v577_v33  ;;  %v581_v41 = vadd.f32 %v734_v22, %v567_v34  ;;  %v582_v42 = vadd.f32 %v734_v22, %v568_v35 }
 0x272   : > { %vm585_vm5 = vcmp.ge.f32.partialorder %v578_v36, 0.0  ;;  %v592_v43 = vmul.f32 0.01, %v578_v36  ;;  %vm586_vm6 = vcmp.ge.f32.partialorder %v579_v37, 0.0  ;;  %v593_v44 = vmul.f32 0.01, %v579_v37 }
 0x273   : > { %v598_v45 = vsel %vm584_vm4, %v577_v33, %v591_v40  ;;  %vm587_vm7 = vcmp.ge.f32.partialorder %v580_v38, 0.0  ;;  %v594_v46 = vmul.f32 0.01, %v580_v38  ;;  %vm588_vm8 = vcmp.ge.f32.partialorder %v581_v41, 0.0 }
 0x274   : > { %605 = vst [vmem:[#allocation12] sm:$0xff] %v598_v45  ;;  %v599_v47 = vsel %vm585_vm5, %v578_v36, %v592_v43  ;;  %v600_v48 = vsel %vm586_vm6, %v579_v37, %v593_v44  ;;  %v595_v49 = vmul.f32 0.01, %v581_v41  ;;  %vm589_vm9 = vcmp.ge.f32.partialorder %v582_v42, 0.0 }
 0x275   : > { %606 = vst [vmem:[#allocation12 + $0x8] sm:$0xff] %v599_v47  ;;  %607 = vst [vmem:[#allocation12 + $0x10] sm:$0xff] %v600_v48  ;;  %v601_v50 = vsel %vm587_vm7, %v580_v38, %v594_v46  ;;  %v596_v51 = vmul.f32 0.01, %v582_v42  ;;  %v583_v52 = vadd.f32 %v734_v22, %v569_v39 }
 0x276   : > { %608 = vst [vmem:[#allocation12 + $0x18] sm:$0xff] %v601_v50  ;;  %v602_v53 = vsel %vm588_vm8, %v581_v41, %v595_v49 }
 0x277   : > { %609 = vst [vmem:[#allocation12 + $0x20] sm:$0xff] %v602_v53  ;;  %v603_v54 = vsel %vm589_vm9, %v582_v42, %v596_v51  ;;  %vm590_vm10 = vcmp.ge.f32.partialorder %v583_v52, 0.0  ;;  %v597_v55 = vmul.f32 0.01, %v583_v52 }
 0x278   : > { %610 = vst [vmem:[#allocation12 + $0x28] sm:$0xff] %v603_v54 }
 0x279   : > { %v604_v56 = vsel %vm590_vm10, %v583_v52, %v597_v55 }
 0x27a   : > { %611 = vst [vmem:[#allocation12 + $0x30] sm:$0x3] %v604_v56 }
 0x27b PF: > { %p1142_p2 = scmp.eq.s32.totalorder %s722_s18, 1  ;;  %s1017_s27 = smov [#allocation12]  }
 0x27c   : > { %s627_s28 = sshll.u32 %s1017_s27, 4  ;;  %s628_s28 = int_to_ptr.vmem [resolvable:$true] %s627_s28 }
 0x27d   : > { %s947_s29 = scalar_lea.vmem %s628_s28, 896  ;;  %s953_s30 = scalar_lea.vmem %s628_s28, 1792 }
 0x27e   : > { %p948_p5 = scmp.ne.s32.totalorder %s628_s28, %s947_s29  ;;  %p954_p11 = scmp.lt.s32.totalorder %s628_s28, %s628_s28 }
 0x27f   : > { %p955_p12 = scmp.lt.s32.totalorder %s953_s30, %s947_s29 }
 0x280   : > { %p949_p4 = pnand %p948_p5, %p1142_p2 }
 0x281   : > { %p956_p13 = por %p955_p12, %p954_p11 }
 0x282   : > { %p950_p10 = pneg %p949_p4 }
 0x284   : > { %p957_p0 = pnand %p956_p13, %p950_p10 }
 0x286   : > { %960 = shalt.err (!%p957_p0)
}
 0x287   : > { %s1018_s5 = smov 128   ;;  %s1019_s18 = smov 8  }
 0x288   : > { %833 = dma.vmem_to_hbm [thread:$0]  (%p1142_p2), %s628_s28, 896, %s1170_s4, [#allocation9], %s1018_s5, %s1018_s5, %s1019_s18  }
 0x289 PF: > { %p855_p7 = scmp.eq.s32.totalorder %s723_s19, 1 }
 0x28b   : > { %p845_p1 = pnand %p855_p7, %p726_p6 }
 0x28d   : > { %p846_p8 = pneg %p845_p1 }
 0x28f   : > { %992 = dma.done.wait (%p846_p8), [#allocation9], 896  }
 0x290   : > { %994 = vsyncadd (%p846_p8), [#allocation9], 4294966400  ;;  %s21_s17 = sadd.s32 1, %s1005_s17   ;;  %s1178_s15 = smov %s1001_s16 }
 0x291   : > { %p18_p9 = scmp.ge.s32.totalorder %s21_s17, 4   ;;  %s1179_s16 = smov %s1181_s20 }
 0x293   :  { %20 = sbr.rel (!%p18_p9) target bundleno = 6 (0x6), region = 103 }
 0x298   :  { %648 = vsyncpa [#allocation8], 1 }
 0x299   :  { %650 = vsyncpa [#allocation8 + $0x1], 1 }
 0x29a   :  { %651 = vsyncpa [#allocation11], 1 }
 0x29b   :  { %652 = vsyncpa [#allocation9], 1 }
 0x29c   :  { %654 = vsyncpa [#allocation9 + $0x1], 1 }

</bundles_post_ra>
